<compile_context>
chip_gen: v6e
topology: v6e:2x2x1
jax: 0.10.0
libtpu: 0.0.40
codegen_flags: <defaults>
</compile_context>

<pallas_src>
import math

import jax
import jax.numpy as jnp
from jax.experimental import pallas as pl
from jax.experimental.pallas import tpu as pltpu


_LANE = 128      # lane width (last dim)
_SUBLANE = 8     # f32 sublane (second-to-last dim)


def _round_up(x, m):
    return (x + m - 1) // m * m


def _pad2(a, rows, cols):
    r, c = a.shape
    if r == rows and c == cols:
        return a
    return jnp.pad(a, ((0, rows - r), (0, cols - c)))


def _make_kernel(num_hidden, use_time):
    """Kernel over one batch tile; weights/biases fully VMEM-resident.

    Ref order: x, [t], w1, b1, w2, b2, [wt1, bt1, wt2, bt2],
               (wh_i, bh_i) * num_hidden, wo, bo, out
    Matmul weights are bf16 (MXU-native); biases, bias-add / ReLU and matmul
    accumulation are f32.  Inter-layer activations are carried in bf16.
    """

    def kernel(*refs):
        out_ref = refs[-1]
        x_ref = refs[0]
        if use_time:
            t_ref = refs[1]
            params = refs[2:-1]
        else:
            params = refs[1:-1]

        def lin(h, w_ref, b_ref, relu=False, keep_f32=False):
            y = jnp.dot(h, w_ref[...], preferred_element_type=jnp.float32)
            y = y + b_ref[...]          # (1, W) f32 bias broadcasts over tile
            if relu:
                y = jnp.maximum(y, 0.0)
            # Carry inter-layer activations in bf16 (halves live VMEM/vregs).
            return y if keep_f32 else y.astype(jnp.bfloat16)

        # first_layer: Linear(in, W) -> ReLU
        h = lin(x_ref[...].astype(jnp.bfloat16), params[0], params[1], relu=True)

        # Time embedding computed early (independent of the main chain until
        # the add, so its dots can interleave in the schedule).
        idx = 4
        th = None
        if use_time:
            # fan_in==1 layer: broadcast multiply with the f32 (1, W) weight
            # (the 1/1000 timestep scale was folded in at pack time).
            th = jnp.maximum(t_ref[...] * params[4][...] + params[5][...], 0.0)
            th = lin(th.astype(jnp.bfloat16), params[6], params[7])
            idx = 8

        # first_layer tail: Linear(W, W)
        h = lin(h, params[2], params[3])
        if use_time:
            h = h + th

        # fc_layers: (num_layers - 2) x [Linear(W, W) -> ReLU], Linear(W, out)
        for _ in range(num_hidden):
            h = lin(h, params[idx], params[idx + 1], relu=True)
            idx += 2
        out_ref[...] = lin(h, params[idx], params[idx + 1],
                           keep_f32=True).astype(out_ref.dtype)

    return kernel


def init_params(key, input_dim, output_dim, num_layers, width):
    """Deterministic Linear params, PyTorch-default-style U(-1/sqrt(fan_in), ...)."""

    def linear(key, fan_in, fan_out):
        kw, kb = jax.random.split(key)
        bound = 1.0 / math.sqrt(fan_in)
        w = jax.random.uniform(kw, (fan_in, fan_out), jnp.float32, -bound, bound)
        b = jax.random.uniform(kb, (1, fan_out), jnp.float32, -bound, bound)
        return w, b

    num_hidden = num_layers - 2
    n_linears = 2 + 2 + num_hidden + 1
    keys = jax.random.split(key, n_linears)
    k = iter(keys)

    params = {}
    params["first"] = [linear(next(k), input_dim, width), linear(next(k), width, width)]
    params["time"] = [linear(next(k), 1, width), linear(next(k), width, width)]
    params["hidden"] = [linear(next(k), width, width) for _ in range(num_hidden)]
    params["out"] = linear(next(k), width, output_dim)
    return params


def pack_params(params):
    """One-time (hoisted) packing: lane-pad feature dims to 128, cast matmul
    weights to bf16, keep biases and the fan_in==1 time weight in f32, and
    fold the 1/1000 timestep scale into wt1."""
    in_dim = params["first"][0][0].shape[0]
    width = params["first"][0][0].shape[1]
    out_dim = params["out"][0].shape[1]

    in_p = _round_up(in_dim, _LANE)
    w_p = _round_up(width, _LANE)
    out_p = _round_up(out_dim, _LANE)

    def wpad(w, rows, cols):
        return _pad2(w.astype(jnp.float32), rows, cols).astype(jnp.bfloat16)

    def bpad(b, cols):
        return _pad2(b.astype(jnp.float32), 1, cols)

    (w1, b1), (w2, b2) = params["first"]
    (wt1, bt1), (wt2, bt2) = params["time"]
    wo, bo = params["out"]

    return {
        "w1": wpad(w1, in_p, w_p), "b1": bpad(b1, w_p),
        "w2": wpad(w2, w_p, w_p), "b2": bpad(b2, w_p),
        # fan_in==1: keep f32 (tiny) and pre-fold the /1000 timestep scale.
        "wt1": _pad2(wt1.astype(jnp.float32) * (1.0 / 1000.0), 1, w_p),
        "bt1": bpad(bt1, w_p),
        "wt2": wpad(wt2, w_p, w_p), "bt2": bpad(bt2, w_p),
        "hidden": [(wpad(wh, w_p, w_p), bpad(bh, w_p))
                   for (wh, bh) in params["hidden"]],
        "wo": wpad(wo, w_p, out_p), "bo": bpad(bo, out_p),
    }


def _squeeze_non_batch(x):
    # torch `.squeeze()` drops every size-1 dim; keep the batch dim so a B==1
    # batch does not collapse (identical semantics for B > 1 inputs).
    if x.ndim > 2:
        drop = tuple(d for d in range(1, x.ndim) if x.shape[d] == 1)
        x = jnp.squeeze(x, axis=drop)
    return x


def _resident_spec(shape):
    """Grid-invariant, single-buffered VMEM-resident BlockSpec."""
    try:
        return pl.BlockSpec(shape, lambda i: (0, 0), pipeline_mode=pl.Buffered(1))
    except TypeError:       # older jax without pipeline_mode kwarg
        return pl.BlockSpec(shape, lambda i: (0, 0))


def fully_connected_forward(packed, x, timesteps=None, *, out_dim, batch_tile=512):
    """Pallas-backed forward pass, mirroring FullyConnectedNetwork.forward."""
    x = _squeeze_non_batch(x).astype(jnp.float32)
    B, in_dim = x.shape
    use_time = timesteps is not None

    in_p = packed["w1"].shape[0]
    w_p = packed["w1"].shape[1]
    out_p = packed["wo"].shape[1]
    num_hidden = len(packed["hidden"])

    # ---- batch tiling ----------------------------------------------------
    b8 = _round_up(B, _SUBLANE)
    tb = min(_round_up(batch_tile, _SUBLANE), b8)
    if b8 // tb <= 1 and b8 >= 2 * _SUBLANE:
        # Guarantee >= 2 batch tiles when there is enough work: both v7x
        # TensorCores (parallel batch axis) get work, and pad waste is capped
        # to < one (smaller) tile.  The extra grid step is ~0.35 us, which is
        # negligible on single-TC chips.
        tb = _round_up(pl.cdiv(b8, 2), _SUBLANE)
    b_pad = _round_up(b8, tb)
    grid = (b_pad // tb,)

    # ---- activations (pad only when actually needed) -----------------------
    x_in = x if x.shape == (b_pad, in_p) else _pad2(x, b_pad, in_p)
    inputs = [x_in]
    in_specs = [pl.BlockSpec((tb, in_p), lambda i: (i, 0))]
    if use_time:
        t = timesteps.astype(jnp.float32).reshape(-1, 1)
        t = t if t.shape[0] == b_pad else _pad2(t, b_pad, 1)
        inputs.append(t)
        in_specs.append(pl.BlockSpec((tb, 1), lambda i: (i, 0)))

    # ---- weights / biases: VMEM-resident, single-buffered ------------------
    flat = [packed["w1"], packed["b1"], packed["w2"], packed["b2"]]
    if use_time:
        flat += [packed["wt1"], packed["bt1"], packed["wt2"], packed["bt2"]]
    for (wh, bh) in packed["hidden"]:
        flat += [wh, bh]
    flat += [packed["wo"], packed["bo"]]

    for arr in flat:
        inputs.append(arr)
        in_specs.append(_resident_spec(arr.shape))

    out_specs = pl.BlockSpec((tb, out_p), lambda i: (i, 0))

    # ---- VMEM budget (generation-aware) ------------------------------------
    def vmem_tile_bytes(a):
        r, c = a.shape
        sub = 16 if a.dtype == jnp.bfloat16 else _SUBLANE   # (1,W) bias -> 8 rows
        return _round_up(r, sub) * _round_up(c, _LANE) * a.dtype.itemsize

    weight_bytes = sum(vmem_tile_bytes(a) for a in flat)        # single-buffered
    act_bytes = 2 * (tb * in_p + tb * out_p) * 4                # x/out, 2-deep
    if use_time:
        act_bytes += 2 * tb * _LANE * 4                         # (tb,1) lane-pads
    live_bytes = 3 * tb * w_p * 2 + tb * w_p * 4                # bf16 h/th + f32 tmp
    need = weight_bytes + act_bytes + live_bytes + (4 << 20)

    try:
        vmem_cap = int(pltpu.get_tpu_info().vmem_capacity_bytes)
    except Exception:
        vmem_cap = 64 << 20
    usable = int(vmem_cap * 0.85)   # ~54 MiB on v7x (64 MiB/TC), ~108 MiB on v5e/v6e
    vmem_limit = int(min(usable, max(need, 32 << 20)))
    # TODO(synk): if single-buffered resident weights exceed ~0.6 * VMEM (deep /
    # wide nets on v7x's 64 MiB per-TC VMEM), move the (W, W) layer weights to
    # memory_space=pl.ANY and double-buffer one layer at a time in-kernel with
    # pltpu.make_async_copy (prefetch layer l+1 while the MXU runs layer l).

    # ---- cost estimate ------------------------------------------------------
    flops = 2 * b_pad * (in_p * w_p + w_p * w_p)                 # first_layer
    if use_time:
        flops += 2 * b_pad * (w_p + w_p * w_p)                   # time_layers
    flops += 2 * b_pad * (num_hidden * w_p * w_p + w_p * out_p)  # fc_layers
    bytes_accessed = sum(int(a.size) * a.dtype.itemsize for a in inputs)
    bytes_accessed += b_pad * out_p * 4

    fn = pl.pallas_call(
        _make_kernel(num_hidden, use_time),
        out_shape=jax.ShapeDtypeStruct((b_pad, out_p), jnp.float32),
        grid_spec=pltpu.PrefetchScalarGridSpec(
            num_scalar_prefetch=0,
            grid=grid,
            in_specs=in_specs,
            out_specs=out_specs,
        ),
        compiler_params=pltpu.CompilerParams(
            dimension_semantics=("parallel",),
            vmem_limit_bytes=vmem_limit,
        ),
        cost_estimate=pl.CostEstimate(
            flops=int(flops), transcendentals=0,
            bytes_accessed=int(bytes_accessed)),
    )
    out = fn(*inputs)
    return out[:B, :out_dim]


def reference_forward(params, x, timesteps=None):
    """Pure-JAX f32 reference for correctness check."""
    x = _squeeze_non_batch(x).astype(jnp.float32)

    def lin(h, wb, relu=False):
        w, b = wb
        y = h @ w + b
        return jnp.maximum(y, 0.0) if relu else y

    h = lin(x, params["first"][0], relu=True)
    h = lin(h, params["first"][1])
    if timesteps is not None:
        t = timesteps.astype(jnp.float32).reshape(-1, 1) / 1000.0
        th = lin(t, params["time"][0], relu=True)
        th = lin(th, params["time"][1])
        h = h + th
    for wb in params["hidden"]:
        h = lin(h, wb, relu=True)
    return lin(h, params["out"])


if __name__ == "__main__":
    # Small, module-consistent shapes.
    batch, input_dim, output_dim, num_layers, width = 2, 16, 8, 4, 32

    key = jax.random.PRNGKey(0)
    kp, kx, kt = jax.random.split(key, 3)

    params = init_params(kp, input_dim, output_dim, num_layers, width)
    packed = pack_params(params)   # hoisted: pad + bf16-cast weights once

    # x arrives with trailing singleton dims (exercises the squeeze path).
    x = jax.random.normal(kx, (batch, input_dim, 1, 1), jnp.float32)
    timesteps = jax.random.randint(kt, (batch,), 0, 1000, jnp.int32)

    fwd = jax.jit(fully_connected_forward,
                  static_argnames=("out_dim", "batch_tile"))

    # With time conditioning.
    out = jax.block_until_ready(fwd(packed, x, timesteps, out_dim=output_dim))
    ref = reference_forward(params, x, timesteps)
    assert out.shape == (batch, output_dim), out.shape
    # bf16 matmul operands + bf16 inter-layer activations (f32 accumulation)
    # -> loosened tolerance vs the f32 reference.
    assert jnp.allclose(out, ref, atol=5e-2, rtol=5e-2), "mismatch (timesteps path)"

    # Without time conditioning.
    out_nt = jax.block_until_ready(fwd(packed, x, None, out_dim=output_dim))
    ref_nt = reference_forward(params, x, None)
    assert out_nt.shape == (batch, output_dim), out_nt.shape
    assert jnp.allclose(out_nt, ref_nt, atol=5e-2, rtol=5e-2), "mismatch (no-time path)"

    print("KERNEL_OK")
</pallas_src>

<mosaic_0001>
module attributes {stable_mosaic.version = 11 : i64} {
  func.func @kernel(%arg0: i32, %arg1: memref<8x128xf32, #tpu.memory_space<vmem>>, %arg2: memref<8x1xf32, #tpu.memory_space<vmem>>, %arg3: memref<128x128xbf16, #tpu.memory_space<vmem>>, %arg4: memref<1x128xf32, #tpu.memory_space<vmem>>, %arg5: memref<128x128xbf16, #tpu.memory_space<vmem>>, %arg6: memref<1x128xf32, #tpu.memory_space<vmem>>, %arg7: memref<1x128xf32, #tpu.memory_space<vmem>>, %arg8: memref<1x128xf32, #tpu.memory_space<vmem>>, %arg9: memref<128x128xbf16, #tpu.memory_space<vmem>>, %arg10: memref<1x128xf32, #tpu.memory_space<vmem>>, %arg11: memref<128x128xbf16, #tpu.memory_space<vmem>>, %arg12: memref<1x128xf32, #tpu.memory_space<vmem>>, %arg13: memref<128x128xbf16, #tpu.memory_space<vmem>>, %arg14: memref<1x128xf32, #tpu.memory_space<vmem>>, %arg15: memref<128x128xbf16, #tpu.memory_space<vmem>>, %arg16: memref<1x128xf32, #tpu.memory_space<vmem>>, %arg17: memref<8x128xf32, #tpu.memory_space<vmem>>) attributes {dimension_semantics = [#tpu.dimension_semantics<parallel>], iteration_bounds = array<i64: 1>, scalar_prefetch = 0 : i64, scratch_operands = 0 : i64, tpu.core_type = #tpu.core_type<tc>, window_params = [{transform_indices = @transform_0, window_bounds = array<i64: 8, 128>}, {transform_indices = @transform_1, window_bounds = array<i64: 8, 1>}, {pipeline_mode = #tpu.pipeline_mode<synchronous>, transform_indices = @transform_2, window_bounds = array<i64: 128, 128>}, {pipeline_mode = #tpu.pipeline_mode<synchronous>, transform_indices = @transform_3, window_bounds = array<i64: 1, 128>}, {pipeline_mode = #tpu.pipeline_mode<synchronous>, transform_indices = @transform_4, window_bounds = array<i64: 128, 128>}, {pipeline_mode = #tpu.pipeline_mode<synchronous>, transform_indices = @transform_5, window_bounds = array<i64: 1, 128>}, {pipeline_mode = #tpu.pipeline_mode<synchronous>, transform_indices = @transform_6, window_bounds = array<i64: 1, 128>}, {pipeline_mode = #tpu.pipeline_mode<synchronous>, transform_indices = @transform_7, window_bounds = array<i64: 1, 128>}, {pipeline_mode = #tpu.pipeline_mode<synchronous>, transform_indices = @transform_8, window_bounds = array<i64: 128, 128>}, {pipeline_mode = #tpu.pipeline_mode<synchronous>, transform_indices = @transform_9, window_bounds = array<i64: 1, 128>}, {pipeline_mode = #tpu.pipeline_mode<synchronous>, transform_indices = @transform_10, window_bounds = array<i64: 128, 128>}, {pipeline_mode = #tpu.pipeline_mode<synchronous>, transform_indices = @transform_11, window_bounds = array<i64: 1, 128>}, {pipeline_mode = #tpu.pipeline_mode<synchronous>, transform_indices = @transform_12, window_bounds = array<i64: 128, 128>}, {pipeline_mode = #tpu.pipeline_mode<synchronous>, transform_indices = @transform_13, window_bounds = array<i64: 1, 128>}, {pipeline_mode = #tpu.pipeline_mode<synchronous>, transform_indices = @transform_14, window_bounds = array<i64: 128, 128>}, {pipeline_mode = #tpu.pipeline_mode<synchronous>, transform_indices = @transform_15, window_bounds = array<i64: 1, 128>}, {transform_indices = @transform_16, window_bounds = array<i64: 8, 128>}]} {
    %c0 = arith.constant 0 : index
    %c0_0 = arith.constant 0 : index
    %0 = vector.load %arg1[%c0, %c0_0] : memref<8x128xf32, #tpu.memory_space<vmem>>, vector<8x128xf32>
    %1 = arith.truncf %0 : vector<8x128xf32> to vector<8x128xbf16>
    %c0_1 = arith.constant 0 : index
    %c0_2 = arith.constant 0 : index
    %2 = vector.load %arg3[%c0_1, %c0_2] : memref<128x128xbf16, #tpu.memory_space<vmem>>, vector<128x128xbf16>
    %cst = arith.constant dense<0.000000e+00> : vector<8x128xf32>
    %3 = tpu.matmul %1, %2, %cst {dimension_numbers = #tpu.dot_dimension_numbers<[1], [0], [0], [1], [0, 0, 1, 1], [], []>} : vector<8x128xbf16>, vector<128x128xbf16>, vector<8x128xf32> -> vector<8x128xf32>
    %c0_3 = arith.constant 0 : index
    %c0_4 = arith.constant 0 : index
    %4 = vector.load %arg4[%c0_3, %c0_4] : memref<1x128xf32, #tpu.memory_space<vmem>>, vector<1x128xf32>
    %5 = vector.broadcast %4 : vector<1x128xf32> to vector<8x128xf32>
    %6 = arith.addf %3, %5 : vector<8x128xf32>
    %cst_5 = arith.constant 0.000000e+00 : f32
    %7 = vector.broadcast %cst_5 : f32 to vector<8x128xf32>
    %8 = arith.maximumf %6, %7 : vector<8x128xf32>
    %9 = arith.truncf %8 : vector<8x128xf32> to vector<8x128xbf16>
    %c0_6 = arith.constant 0 : index
    %c0_7 = arith.constant 0 : index
    %10 = vector.load %arg2[%c0_6, %c0_7] : memref<8x1xf32, #tpu.memory_space<vmem>>, vector<8x1xf32>
    %c0_8 = arith.constant 0 : index
    %c0_9 = arith.constant 0 : index
    %11 = vector.load %arg7[%c0_8, %c0_9] : memref<1x128xf32, #tpu.memory_space<vmem>>, vector<1x128xf32>
    %12 = vector.broadcast %10 : vector<8x1xf32> to vector<8x128xf32>
    %13 = vector.broadcast %11 : vector<1x128xf32> to vector<8x128xf32>
    %14 = arith.mulf %12, %13 : vector<8x128xf32>
    %c0_10 = arith.constant 0 : index
    %c0_11 = arith.constant 0 : index
    %15 = vector.load %arg8[%c0_10, %c0_11] : memref<1x128xf32, #tpu.memory_space<vmem>>, vector<1x128xf32>
    %16 = vector.broadcast %15 : vector<1x128xf32> to vector<8x128xf32>
    %17 = arith.addf %14, %16 : vector<8x128xf32>
    %cst_12 = arith.constant 0.000000e+00 : f32
    %18 = vector.broadcast %cst_12 : f32 to vector<8x128xf32>
    %19 = arith.maximumf %17, %18 : vector<8x128xf32>
    %20 = arith.truncf %19 : vector<8x128xf32> to vector<8x128xbf16>
    %c0_13 = arith.constant 0 : index
    %c0_14 = arith.constant 0 : index
    %21 = vector.load %arg9[%c0_13, %c0_14] : memref<128x128xbf16, #tpu.memory_space<vmem>>, vector<128x128xbf16>
    %cst_15 = arith.constant dense<0.000000e+00> : vector<8x128xf32>
    %22 = tpu.matmul %20, %21, %cst_15 {dimension_numbers = #tpu.dot_dimension_numbers<[1], [0], [0], [1], [0, 0, 1, 1], [], []>} : vector<8x128xbf16>, vector<128x128xbf16>, vector<8x128xf32> -> vector<8x128xf32>
    %c0_16 = arith.constant 0 : index
    %c0_17 = arith.constant 0 : index
    %23 = vector.load %arg10[%c0_16, %c0_17] : memref<1x128xf32, #tpu.memory_space<vmem>>, vector<1x128xf32>
    %24 = vector.broadcast %23 : vector<1x128xf32> to vector<8x128xf32>
    %25 = arith.addf %22, %24 : vector<8x128xf32>
    %26 = arith.truncf %25 : vector<8x128xf32> to vector<8x128xbf16>
    %c0_18 = arith.constant 0 : index
    %c0_19 = arith.constant 0 : index
    %27 = vector.load %arg5[%c0_18, %c0_19] : memref<128x128xbf16, #tpu.memory_space<vmem>>, vector<128x128xbf16>
    %cst_20 = arith.constant dense<0.000000e+00> : vector<8x128xf32>
    %28 = tpu.matmul %9, %27, %cst_20 {dimension_numbers = #tpu.dot_dimension_numbers<[1], [0], [0], [1], [0, 0, 1, 1], [], []>} : vector<8x128xbf16>, vector<128x128xbf16>, vector<8x128xf32> -> vector<8x128xf32>
    %c0_21 = arith.constant 0 : index
    %c0_22 = arith.constant 0 : index
    %29 = vector.load %arg6[%c0_21, %c0_22] : memref<1x128xf32, #tpu.memory_space<vmem>>, vector<1x128xf32>
    %30 = vector.broadcast %29 : vector<1x128xf32> to vector<8x128xf32>
    %31 = arith.addf %28, %30 : vector<8x128xf32>
    %32 = arith.truncf %31 : vector<8x128xf32> to vector<8x128xbf16>
    %33 = arith.addf %32, %26 : vector<8x128xbf16>
    %c0_23 = arith.constant 0 : index
    %c0_24 = arith.constant 0 : index
    %34 = vector.load %arg11[%c0_23, %c0_24] : memref<128x128xbf16, #tpu.memory_space<vmem>>, vector<128x128xbf16>
    %cst_25 = arith.constant dense<0.000000e+00> : vector<8x128xf32>
    %35 = tpu.matmul %33, %34, %cst_25 {dimension_numbers = #tpu.dot_dimension_numbers<[1], [0], [0], [1], [0, 0, 1, 1], [], []>} : vector<8x128xbf16>, vector<128x128xbf16>, vector<8x128xf32> -> vector<8x128xf32>
    %c0_26 = arith.constant 0 : index
    %c0_27 = arith.constant 0 : index
    %36 = vector.load %arg12[%c0_26, %c0_27] : memref<1x128xf32, #tpu.memory_space<vmem>>, vector<1x128xf32>
    %37 = vector.broadcast %36 : vector<1x128xf32> to vector<8x128xf32>
    %38 = arith.addf %35, %37 : vector<8x128xf32>
    %cst_28 = arith.constant 0.000000e+00 : f32
    %39 = vector.broadcast %cst_28 : f32 to vector<8x128xf32>
    %40 = arith.maximumf %38, %39 : vector<8x128xf32>
    %41 = arith.truncf %40 : vector<8x128xf32> to vector<8x128xbf16>
    %c0_29 = arith.constant 0 : index
    %c0_30 = arith.constant 0 : index
    %42 = vector.load %arg13[%c0_29, %c0_30] : memref<128x128xbf16, #tpu.memory_space<vmem>>, vector<128x128xbf16>
    %cst_31 = arith.constant dense<0.000000e+00> : vector<8x128xf32>
    %43 = tpu.matmul %41, %42, %cst_31 {dimension_numbers = #tpu.dot_dimension_numbers<[1], [0], [0], [1], [0, 0, 1, 1], [], []>} : vector<8x128xbf16>, vector<128x128xbf16>, vector<8x128xf32> -> vector<8x128xf32>
    %c0_32 = arith.constant 0 : index
    %c0_33 = arith.constant 0 : index
    %44 = vector.load %arg14[%c0_32, %c0_33] : memref<1x128xf32, #tpu.memory_space<vmem>>, vector<1x128xf32>
    %45 = vector.broadcast %44 : vector<1x128xf32> to vector<8x128xf32>
    %46 = arith.addf %43, %45 : vector<8x128xf32>
    %cst_34 = arith.constant 0.000000e+00 : f32
    %47 = vector.broadcast %cst_34 : f32 to vector<8x128xf32>
    %48 = arith.maximumf %46, %47 : vector<8x128xf32>
    %49 = arith.truncf %48 : vector<8x128xf32> to vector<8x128xbf16>
    %c0_35 = arith.constant 0 : index
    %c0_36 = arith.constant 0 : index
    %50 = vector.load %arg15[%c0_35, %c0_36] : memref<128x128xbf16, #tpu.memory_space<vmem>>, vector<128x128xbf16>
    %cst_37 = arith.constant dense<0.000000e+00> : vector<8x128xf32>
    %51 = tpu.matmul %49, %50, %cst_37 {dimension_numbers = #tpu.dot_dimension_numbers<[1], [0], [0], [1], [0, 0, 1, 1], [], []>} : vector<8x128xbf16>, vector<128x128xbf16>, vector<8x128xf32> -> vector<8x128xf32>
    %c0_38 = arith.constant 0 : index
    %c0_39 = arith.constant 0 : index
    %52 = vector.load %arg16[%c0_38, %c0_39] : memref<1x128xf32, #tpu.memory_space<vmem>>, vector<1x128xf32>
    %53 = vector.broadcast %52 : vector<1x128xf32> to vector<8x128xf32>
    %54 = arith.addf %51, %53 : vector<8x128xf32>
    %c0_40 = arith.constant 0 : index
    %c0_41 = arith.constant 0 : index
    %55 = vector.load %arg17[%c0_40, %c0_41] : memref<8x128xf32, #tpu.memory_space<vmem>>, vector<8x128xf32>
    tpu.vector_store %arg17[%c0_40, %c0_41], %54 {strides = array<i32>} : memref<8x128xf32, #tpu.memory_space<vmem>>, vector<8x128xf32>,
    return
  }
  func.func @transform_0(%arg0: i32) -> (i32, i32) {
    %c0_i32 = arith.constant 0 : i32
    %c0_i32_0 = arith.constant 0 : i32
    return %arg0, %c0_i32 : i32, i32
  }
  func.func @transform_1(%arg0: i32) -> (i32, i32) {
    %c0_i32 = arith.constant 0 : i32
    %c0_i32_0 = arith.constant 0 : i32
    return %arg0, %c0_i32 : i32, i32
  }
  func.func @transform_2(%arg0: i32) -> (i32, i32) {
    %c0_i32 = arith.constant 0 : i32
    %c0_i32_0 = arith.constant 0 : i32
    %c0_i32_1 = arith.constant 0 : i32
    return %c0_i32, %c0_i32_0 : i32, i32
  }
  func.func @transform_3(%arg0: i32) -> (i32, i32) {
    %c0_i32 = arith.constant 0 : i32
    %c0_i32_0 = arith.constant 0 : i32
    %c0_i32_1 = arith.constant 0 : i32
    return %c0_i32, %c0_i32_0 : i32, i32
  }
  func.func @transform_4(%arg0: i32) -> (i32, i32) {
    %c0_i32 = arith.constant 0 : i32
    %c0_i32_0 = arith.constant 0 : i32
    %c0_i32_1 = arith.constant 0 : i32
    return %c0_i32, %c0_i32_0 : i32, i32
  }
  func.func @transform_5(%arg0: i32) -> (i32, i32) {
    %c0_i32 = arith.constant 0 : i32
    %c0_i32_0 = arith.constant 0 : i32
    %c0_i32_1 = arith.constant 0 : i32
    return %c0_i32, %c0_i32_0 : i32, i32
  }
  func.func @transform_6(%arg0: i32) -> (i32, i32) {
    %c0_i32 = arith.constant 0 : i32
    %c0_i32_0 = arith.constant 0 : i32
    %c0_i32_1 = arith.constant 0 : i32
    return %c0_i32, %c0_i32_0 : i32, i32
  }
  func.func @transform_7(%arg0: i32) -> (i32, i32) {
    %c0_i32 = arith.constant 0 : i32
    %c0_i32_0 = arith.constant 0 : i32
    %c0_i32_1 = arith.constant 0 : i32
    return %c0_i32, %c0_i32_0 : i32, i32
  }
  func.func @transform_8(%arg0: i32) -> (i32, i32) {
    %c0_i32 = arith.constant 0 : i32
    %c0_i32_0 = arith.constant 0 : i32
    %c0_i32_1 = arith.constant 0 : i32
    return %c0_i32, %c0_i32_0 : i32, i32
  }
  func.func @transform_9(%arg0: i32) -> (i32, i32) {
    %c0_i32 = arith.constant 0 : i32
    %c0_i32_0 = arith.constant 0 : i32
    %c0_i32_1 = arith.constant 0 : i32
    return %c0_i32, %c0_i32_0 : i32, i32
  }
  func.func @transform_10(%arg0: i32) -> (i32, i32) {
    %c0_i32 = arith.constant 0 : i32
    %c0_i32_0 = arith.constant 0 : i32
    %c0_i32_1 = arith.constant 0 : i32
    return %c0_i32, %c0_i32_0 : i32, i32
  }
  func.func @transform_11(%arg0: i32) -> (i32, i32) {
    %c0_i32 = arith.constant 0 : i32
    %c0_i32_0 = arith.constant 0 : i32
    %c0_i32_1 = arith.constant 0 : i32
    return %c0_i32, %c0_i32_0 : i32, i32
  }
  func.func @transform_12(%arg0: i32) -> (i32, i32) {
    %c0_i32 = arith.constant 0 : i32
    %c0_i32_0 = arith.constant 0 : i32
    %c0_i32_1 = arith.constant 0 : i32
    return %c0_i32, %c0_i32_0 : i32, i32
  }
  func.func @transform_13(%arg0: i32) -> (i32, i32) {
    %c0_i32 = arith.constant 0 : i32
    %c0_i32_0 = arith.constant 0 : i32
    %c0_i32_1 = arith.constant 0 : i32
    return %c0_i32, %c0_i32_0 : i32, i32
  }
  func.func @transform_14(%arg0: i32) -> (i32, i32) {
    %c0_i32 = arith.constant 0 : i32
    %c0_i32_0 = arith.constant 0 : i32
    %c0_i32_1 = arith.constant 0 : i32
    return %c0_i32, %c0_i32_0 : i32, i32
  }
  func.func @transform_15(%arg0: i32) -> (i32, i32) {
    %c0_i32 = arith.constant 0 : i32
    %c0_i32_0 = arith.constant 0 : i32
    %c0_i32_1 = arith.constant 0 : i32
    return %c0_i32, %c0_i32_0 : i32, i32
  }
  func.func @transform_16(%arg0: i32) -> (i32, i32) {
    %c0_i32 = arith.constant 0 : i32
    %c0_i32_0 = arith.constant 0 : i32
    return %arg0, %c0_i32 : i32, i32
  }
}

</mosaic_0001>

<bundles_post_ra>
// kernel: fully_connected_forward.1
= control target key start
LH: loop header
LB: loop body
LE: loop exit
PB: predicated region body
PF: predicated region fallthrough
CT: control target
= control target key end

     0   :  { %s1489_s0 = inlined_call_operand.vmem [shape: f32[8,128], index: 0, kind: input, shape index: {}]   ;;  %s1490_s1 = inlined_call_operand.vmem [shape: f32[8,1], index: 1, kind: input, shape index: {}]   ;;  %s1491_s2 = inlined_call_operand.hbm [shape: bf16[128,128], index: 2, kind: input, shape index: {}]   ;;  %s1492_s3 = inlined_call_operand.vmem [shape: f32[1,128], index: 3, kind: input, shape index: {}]   ;;  %s1493_s4 = inlined_call_operand.hbm [shape: bf16[128,128], index: 4, kind: input, shape index: {}]   ;;  %s1494_s5 = inlined_call_operand.vmem [shape: f32[1,128], index: 5, kind: input, shape index: {}]   ;;  %s1495_s6 = inlined_call_operand.vmem [shape: f32[1,128], index: 6, kind: input, shape index: {}]   ;;  %s1496_s7 = inlined_call_operand.vmem [shape: f32[1,128], index: 7, kind: input, shape index: {}]   ;;  %s1497_s8 = inlined_call_operand.hbm [shape: bf16[128,128], index: 8, kind: input, shape index: {}]   ;;  %s1498_s9 = inlined_call_operand.vmem [shape: f32[1,128], index: 9, kind: input, shape index: {}]   ;;  %s1499_s10 = inlined_call_operand.hbm [shape: bf16[128,128], index: 10, kind: input, shape index: {}]   ;;  %s1500_s11 = inlined_call_operand.vmem [shape: f32[1,128], index: 11, kind: input, shape index: {}]   ;;  %s1501_s12 = inlined_call_operand.hbm [shape: bf16[128,128], index: 12, kind: input, shape index: {}]   ;;  %s1502_s13 = inlined_call_operand.vmem [shape: f32[1,128], index: 13, kind: input, shape index: {}]   ;;  %s1503_s14 = inlined_call_operand.hbm [shape: bf16[128,128], index: 14, kind: input, shape index: {}]   ;;  %s1504_s15 = inlined_call_operand.vmem [shape: f32[1,128], index: 15, kind: input, shape index: {}]   ;;  %s1505_s16 = inlined_call_operand.vmem [shape: f32[8,128], index: 16, kind: output, shape index: {}]  }
   0x1   :  { %1506 = sst [smem:[#allocation16_spill]] %s1489_s0 }
   0x2   :  { %21 = vsyncpa [#allocation3], 0 }
   0x3   :  { %22 = vsyncpa [#allocation5], 0 }
   0x4   :  { %23 = vsyncpa [#allocation8], 0 }
   0x5   :  { %24 = vsyncpa [#allocation11], 0  ;;  %s1264_s21 = smov [#allocation4]   ;;  %s1265_s23 = smov [#allocation7]  }
   0x6   :  { %s48_s22 = sshll.u32 %s1264_s21, 4  ;;  %s80_s24 = sshll.u32 %s1265_s23, 4  ;;  %s49_s22 = int_to_ptr.vmem [resolvable:$true] %s48_s22  ;;  %s81_s24 = int_to_ptr.vmem [resolvable:$true] %s80_s24 }
   0x7   :  { %s1144_s25 = scalar_lea.vmem %s49_s22, 1024  ;;  %p1149_p1 = scmp.lt.s32.totalorder %s49_s22, %s49_s22 }
   0x8   :  { %p1145_p0 = scmp.ne.s32.totalorder %s49_s22, %s1144_s25  ;;  %p1150_p2 = scmp.lt.s32.totalorder %s1144_s25, %s1144_s25 }
   0xa   :  { %p1151_p3 = por %p1150_p2, %p1149_p1 }
   0xc   :  { %p1152_p4 = pnand %p1151_p3, %p1145_p0 }
   0xe   :  { %1155 = shalt.err (!%p1152_p4)
}
   0xf   :  { %s1266_s26 = smov 64   ;;  %s1267_s27 = smov 4  }
  0x10   :  { %54 = dma.hbm_to_vmem [thread:$0]  %s1493_s4, 1024, %s49_s22, [#allocation5], %s1266_s26, %s1266_s26, %s1267_s27  }
  0x11   :  { %s1164_s30 = scalar_lea.vmem %s81_s24, 1024  ;;  %p1169_p6 = scmp.lt.s32.totalorder %s81_s24, %s81_s24 }
  0x12   :  { %p1165_p5 = scmp.ne.s32.totalorder %s81_s24, %s1164_s30  ;;  %p1170_p7 = scmp.lt.s32.totalorder %s1164_s30, %s1164_s30 }
  0x14   :  { %p1171_p8 = por %p1170_p7, %p1169_p6 }
  0x16   :  { %p1172_p9 = pnand %p1171_p8, %p1165_p5 }
  0x18   :  { %1175 = shalt.err (!%p1172_p9)
}
  0x19   :  { %86 = dma.hbm_to_vmem [thread:$0]  %s1499_s10, 1024, %s81_s24, [#allocation8], %s1266_s26, %s1266_s26, %s1267_s27  }
  0x1a   :  { %s1268_s18 = smov [#allocation2]   ;;  %s1269_s20 = smov [#allocation6]  }
  0x1b   :  { %s34_s19 = sshll.u32 %s1268_s18, 4  ;;  %s66_s21 = sshll.u32 %s1269_s20, 4  ;;  %s35_s19 = int_to_ptr.vmem [resolvable:$true] %s34_s19  ;;  %s67_s21 = int_to_ptr.vmem [resolvable:$true] %s66_s21 }
  0x1c   :  { %s1184_s4 = scalar_lea.vmem %s35_s19, 1024  ;;  %p1189_p11 = scmp.lt.s32.totalorder %s35_s19, %s35_s19 }
  0x1d   :  { %p1185_p10 = scmp.ne.s32.totalorder %s35_s19, %s1184_s4  ;;  %p1190_p12 = scmp.lt.s32.totalorder %s1184_s4, %s1184_s4 }
  0x1f   :  { %p1191_p13 = por %p1190_p12, %p1189_p11 }
  0x21   :  { %p1192_p0 = pnand %p1191_p13, %p1185_p10 }
  0x23   :  { %1195 = shalt.err (!%p1192_p0)
}
  0x24   :  { %40 = dma.hbm_to_vmem [thread:$0]  %s1491_s2, 1024, %s35_s19, [#allocation3], %s1266_s26, %s1266_s26, %s1267_s27  }
  0x25   :  { %s1204_s10 = scalar_lea.vmem %s67_s21, 1024  ;;  %p1209_p2 = scmp.lt.s32.totalorder %s67_s21, %s67_s21 }
  0x26   :  { %p1205_p1 = scmp.ne.s32.totalorder %s67_s21, %s1204_s10  ;;  %p1210_p3 = scmp.lt.s32.totalorder %s1204_s10, %s1204_s10 }
  0x28   :  { %p1211_p4 = por %p1210_p3, %p1209_p2 }
  0x2a   :  { %p1212_p5 = pnand %p1211_p4, %p1205_p1 }
  0x2c   :  { %1215 = shalt.err (!%p1212_p5)
}
  0x2d   :  { %72 = dma.hbm_to_vmem [thread:$0]  %s1497_s8, 1024, %s67_s21, [#allocation5], %s1266_s26, %s1266_s26, %s1267_s27  }
  0x2e   :  { %s1270_s28 = smov [#allocation9]   ;;  %s1271_s30 = smov [#allocation10]  }
  0x2f   :  { %s94_s29 = sshll.u32 %s1270_s28, 4  ;;  %s108_s0 = sshll.u32 %s1271_s30, 4  ;;  %s95_s29 = int_to_ptr.vmem [resolvable:$true] %s94_s29  ;;  %s109_s0 = int_to_ptr.vmem [resolvable:$true] %s108_s0 }
  0x30   :  { %s1224_s2 = scalar_lea.vmem %s95_s29, 1024  ;;  %p1229_p7 = scmp.lt.s32.totalorder %s95_s29, %s95_s29 }
  0x31   :  { %p1225_p6 = scmp.ne.s32.totalorder %s95_s29, %s1224_s2  ;;  %p1230_p8 = scmp.lt.s32.totalorder %s1224_s2, %s1224_s2 }
  0x33   :  { %p1231_p9 = por %p1230_p8, %p1229_p7 }
  0x35   :  { %p1232_p10 = pnand %p1231_p9, %p1225_p6 }
  0x37   :  { %1235 = shalt.err (!%p1232_p10)
}
  0x38   :  { %100 = dma.hbm_to_vmem [thread:$0]  %s1501_s12, 1024, %s95_s29, [#allocation8], %s1266_s26, %s1266_s26, %s1267_s27  }
  0x39   :  { %s1244_s8 = scalar_lea.vmem %s109_s0, 1024  ;;  %p1249_p12 = scmp.lt.s32.totalorder %s109_s0, %s109_s0 }
  0x3a   :  { %p1245_p11 = scmp.ne.s32.totalorder %s109_s0, %s1244_s8  ;;  %p1250_p13 = scmp.lt.s32.totalorder %s1244_s8, %s1244_s8 }
  0x3c   :  { %p1251_p0 = por %p1250_p13, %p1249_p12 }
  0x3e   :  { %p1252_p1 = pnand %p1251_p0, %p1245_p11 }
  0x40   :  { %1255 = shalt.err (!%p1252_p1)
}
  0x41   :  { %114 = dma.hbm_to_vmem [thread:$0]  %s1503_s14, 1024, %s109_s0, [#allocation11], %s1266_s26, %s1266_s26, %s1267_s27  }
  0x42   :  { %1256 = dma.done.wait [#allocation3], 1024  }
  0x43   :  { %1257 = vsyncadd [#allocation3], 4294966272 }
  0x44   :  { %1258 = dma.done.wait [#allocation5], 2048  }
  0x45   :  { %1259 = vsyncadd [#allocation5], 4294965248 }
  0x46   :  { %1260 = dma.done.wait [#allocation8], 2048  }
  0x47   :  { %1261 = vsyncadd [#allocation8], 4294965248 }
  0x48   :  { %1262 = dma.done.wait [#allocation11], 1024  }
  0x49   :  { %1263 = vsyncadd [#allocation11], 4294966272  ;;  %v1272_v0 = vmov 0.0   ;;  %vm1273_vm0 = vmmov 0   ;;  %v1274_v1 = vmov 0   ;;  %v1088_v2 = vld [vmem:[#allocation2 + $0x38] sm:$0xff]  }
  0x4a   :  { %956 = vmatprep.subr.bf16.mxu0 %v1272_v0  ;;  %972 = vmatprep.mubr.msk.bf16.mxu0 %vm1273_vm0, %v1272_v0  ;;  %v1089_v3 = vld [vmem:[#allocation2 + $0x30] sm:$0xff]   ;;  %v1090_v4 = vld [vmem:[#allocation2 + $0x28] sm:$0xff]   ;;  %v251_v5 = vld [vmem:[%s1490_s1] sm:$0xff]  ;;  %s1507_s27 = sld [smem:[#allocation16_spill]] }
  0x4b   :  { %1087 = vset.pattern.permute.xlu0 %v1274_v1  ;;  %976 = vmatprep.subr.bf16.mxu1 %v1272_v0  ;;  %v1096_v6 = vld [vmem:[#allocation6 + $0x38] sm:$0xff]   ;;  %v1091_v7 = vld [vmem:[#allocation2 + $0x20] sm:$0xff]   ;;  %v1097_v8 = vld [vmem:[#allocation6 + $0x30] sm:$0xff]  }
  0x4c   :  { %992 = vmatprep.mubr.msk.bf16.mxu1 %vm1273_vm0, %v1272_v0  ;;  %957 = vmatpush3.bf16.msra.mxu0 %v1088_v2  ;;  %v1092_v9 = vld [vmem:[#allocation2 + $0x18] sm:$0xff]   ;;  %v1099_v10 = vld [vmem:[#allocation6 + $0x28] sm:$0xff]   ;;  %v1093_v11 = vld [vmem:[#allocation2 + $0x10] sm:$0xff]  }
  0x4d   :  { %958 = vmatprep.subr.bf16.mxu0 %v1272_v0  ;;  %255 = vperm.xlu0 %1087, %v251_v5   ;;  %v1101_v12 = vld [vmem:[#allocation6 + $0x20] sm:$0xff]   ;;  %v1094_v13 = vld [vmem:[#allocation2 + $0x8] sm:$0xff]   ;;  %v1103_v14 = vld [vmem:[#allocation6 + $0x18] sm:$0xff]  }
  0x4e   :  { %977 = vmatpush3.bf16.msra.mxu1 %v1096_v6  ;;  %v1095_v15 = vld [vmem:[#allocation2] sm:$0xff]   ;;  %v1105_v17 = vld [vmem:[#allocation6 + $0x10] sm:$0xff]   ;;  %v1098_v18 = vld [vmem:[#allocation4 + $0x38] sm:$0xff]  }
  0x4f   :  { %978 = vmatprep.subr.bf16.mxu1 %v1272_v0  ;;  %v1107_v20 = vld [vmem:[#allocation6 + $0x8] sm:$0xff]   ;;  %v1100_v21 = vld [vmem:[#allocation4 + $0x30] sm:$0xff]   ;;  %v1109_v22 = vld [vmem:[#allocation6] sm:$0xff]  }
  0x50   :  { %959 = vmatpush3.bf16.msra.mxu0 %v1089_v3  ;;  %v136_v16 = vld [vmem:[%s1507_s27] sm:$0xff]  ;;  %v1102_v23 = vld [vmem:[#allocation4 + $0x28] sm:$0xff]   ;;  %v1106_v25 = vld [vmem:[#allocation4 + $0x18] sm:$0xff]  }
  0x51   :  { %960 = vmatprep.subr.bf16.mxu0 %v1272_v0  ;;  %v137_v19 = vpack.c.bf16 %v136_v16, %v136_v16  ;;  %v1104_v24 = vld [vmem:[#allocation4 + $0x20] sm:$0xff]   ;;  %v1108_v26 = vld [vmem:[#allocation4 + $0x10] sm:$0xff]   ;;  %v1110_v27 = vld [vmem:[#allocation4 + $0x8] sm:$0xff]  }
  0x52   :  { %979 = vmatpush3.bf16.msra.mxu1 %v1097_v8  ;;  %v1111_v28 = vld [vmem:[#allocation4] sm:$0xff]   ;;  %v1112_v35 = vld [vmem:[#allocation7 + $0x38] sm:$0xff]   ;;  %v1113_v37 = vld [vmem:[#allocation7 + $0x30] sm:$0xff]  }
  0x53   :  { %980 = vmatprep.subr.bf16.mxu1 %v1272_v0  ;;  %v855_v29 = vld [vmem:[%s1495_s6] ss:$0 sm:$0xff]  ;;  %v1114_v38 = vld [vmem:[#allocation7 + $0x28] sm:$0xff]   ;;  %v1116_v40 = vld [vmem:[#allocation7 + $0x18] sm:$0xff]  }
  0x54   :  { %961 = vmatpush3.bf16.msra.mxu0 %v1090_v4  ;;  %v856_v30 = vld [vmem:[%s1496_s7] ss:$0 sm:$0xff]  ;;  %v1117_v41 = vld [vmem:[#allocation7 + $0x10] sm:$0xff]   ;;  %v1118_v50 = vld [vmem:[#allocation7 + $0x8] sm:$0xff]  }
  0x55   :  { %962 = vmatprep.subr.bf16.mxu0 %v1272_v0  ;;  %v1115_v39 = vld [vmem:[#allocation7 + $0x20] sm:$0xff]   ;;  %v1120_v52 = vld [vmem:[#allocation9 + $0x38] sm:$0xff]   ;;  %v1121_v53 = vld [vmem:[#allocation9 + $0x30] sm:$0xff]  }
  0x56   :  { %981 = vmatpush3.bf16.msra.mxu1 %v1099_v10  ;;  %v846_v42 = vld [vmem:[%s1492_s3] ss:$0 sm:$0xff]  ;;  %v1122_v54 = vld [vmem:[#allocation9 + $0x28] sm:$0xff]   ;;  %v1124_v56 = vld [vmem:[#allocation9 + $0x18] sm:$0xff]  }
  0x57   :  { %982 = vmatprep.subr.bf16.mxu1 %v1272_v0  ;;  %v1119_v51 = vld [vmem:[#allocation7] sm:$0xff]   ;;  %v1125_v57 = vld [vmem:[#allocation9 + $0x10] sm:$0xff]   ;;  %v1126_v10 = vld [vmem:[#allocation9 + $0x8] sm:$0xff]  }
  0x58   :  { %963 = vmatpush3.bf16.msra.mxu0 %v1091_v7  ;;  %v1123_v55 = vld [vmem:[#allocation9 + $0x20] sm:$0xff]   ;;  %v1132_v16 = vld [vmem:[#allocation10 + $0x18] sm:$0xff]  }
  0x59   :  { %964 = vmatprep.subr.bf16.mxu0 %v1272_v0  ;;  %v857_v62 = vld [vmem:[%s1498_s9] ss:$0 sm:$0xff] }
  0x5a   :  { %983 = vmatpush3.bf16.msra.mxu1 %v1101_v12  ;;  %v866_v1 = vld [vmem:[%s1494_s5] ss:$0 sm:$0xff]  ;;  %v1128_v12 = vld [vmem:[#allocation10 + $0x38] sm:$0xff]  }
  0x5b   :  { %984 = vmatprep.subr.bf16.mxu1 %v1272_v0 }
  0x5c   :  { %965 = vmatpush3.bf16.msra.mxu0 %v1092_v9 }
  0x5d   :  { %966 = vmatprep.subr.bf16.mxu0 %v1272_v0 }
  0x5e   :  { %985 = vmatpush3.bf16.msra.mxu1 %v1103_v14  ;;  %v1130_v14 = vld [vmem:[#allocation10 + $0x28] sm:$0xff]  }
  0x5f   :  { %986 = vmatprep.subr.bf16.mxu1 %v1272_v0 }
  0x60   :  { %967 = vmatpush3.bf16.msra.mxu0 %v1093_v11  ;;  %v1127_v11 = vld [vmem:[#allocation9] sm:$0xff]  }
  0x61   :  { %968 = vmatprep.subr.bf16.mxu0 %v1272_v0 }
  0x62   :  { %987 = vmatpush3.bf16.msra.mxu1 %v1105_v17  ;;  %v1133_v17 = vld [vmem:[#allocation10 + $0x10] sm:$0xff]  }
  0x63   :  { %988 = vmatprep.subr.bf16.mxu1 %v1272_v0 }
  0x64   :  { %969 = vmatpush3.bf16.msra.mxu0 %v1094_v13  ;;  %v1129_v13 = vld [vmem:[#allocation10 + $0x30] sm:$0xff]  }
  0x65   :  { %970 = vmatprep.subr.bf16.mxu0 %v1272_v0 }
  0x66   :  { %989 = vmatpush3.bf16.msra.mxu1 %v1107_v20 }
  0x67   :  { %990 = vmatprep.subr.bf16.mxu1 %v1272_v0 }
  0x68   :  { %971 = vmatpush3.bf16.msra.mxu0 %v1095_v15  ;;  %v1131_v15 = vld [vmem:[#allocation10 + $0x20] sm:$0xff]  }
  0x69   :  { %996 = vmatprep.subr.bf16.mxu0 %v1272_v0 }
  0x6a   :  { %991 = vmatpush3.bf16.msra.mxu1 %v1109_v22 }
  0x6b   :  { %973 = vmatmul.mubr.bf16.vlgmr.msra.gmra.mxu0 %v137_v19  ;;  %1016 = vmatprep.subr.bf16.mxu1 %v1272_v0 }
  0x6c   :  { %997 = vmatpush3.bf16.msra.mxu0 %v1098_v18  ;;  %1012 = vmatprep.mubr.msk.bf16.mxu0 %vm1273_vm0, %v1272_v0  ;;  %v875_v18 = vld [vmem:[%s1500_s11] ss:$0 sm:$0xff] }
  0x6d   :  { %998 = vmatprep.subr.bf16.mxu0 %v1272_v0 }
  0x70   :  { %999 = vmatpush3.bf16.msra.mxu0 %v1100_v21 }
  0x71   :  { %1000 = vmatprep.subr.bf16.mxu0 %v1272_v0 }
  0x74   :  { %1001 = vmatpush3.bf16.msra.mxu0 %v1102_v23 }
  0x75   :  { %1002 = vmatprep.subr.bf16.mxu0 %v1272_v0 }
  0x78   :  { %1003 = vmatpush3.bf16.msra.mxu0 %v1104_v24 }
  0x79   :  { %1004 = vmatprep.subr.bf16.mxu0 %v1272_v0 }
  0x7c   :  { %1005 = vmatpush3.bf16.msra.mxu0 %v1106_v25 }
  0x7d   :  { %1006 = vmatprep.subr.bf16.mxu0 %v1272_v0 }
  0x80   :  { %1007 = vmatpush3.bf16.msra.mxu0 %v1108_v26  ;;  %v1134_v26 = vld [vmem:[#allocation10 + $0x8] sm:$0xff]  }
  0x81   :  { %1008 = vmatprep.subr.bf16.mxu0 %v1272_v0 }
  0x84   :  { %1009 = vmatpush3.bf16.msra.mxu0 %v1110_v27  ;;  %v1135_v27 = vld [vmem:[#allocation10] sm:$0xff]  }
  0x85   :  { %1010 = vmatprep.subr.bf16.mxu0 %v1272_v0 }
  0x88   :  { %1011 = vmatpush3.bf16.msra.mxu0 %v1111_v28  ;;  %v884_v28 = vld [vmem:[%s1502_s13] ss:$0 sm:$0xff] }
  0x89   :  { %1036 = vmatprep.subr.bf16.mxu0 %v1272_v0 }
  0xc8   :  { %v256_v31 = vpop.permute.xlu0 %255 }
  0xc9   :  { %v264_v32 = vmul.f32 %v855_v29, %v256_v31 }
  0xcb   :  { %v272_v33 = vadd.f32 %v856_v30, %v264_v32 }
  0xcd   :  { %v273_v34 = vmax.f32 %v272_v33, 0.0 }
  0xcf   :  { %v274_v36 = vpack.c.bf16 %v273_v34, %v273_v34 }
  0xd1   :  { %993 = vmatmul.mubr.bf16.vlgmr.msra.gmra.mxu1 %v274_v36  ;;  %v893_v36 = vld [vmem:[%s1504_s15] ss:$0 sm:$0xff] }
  0xd2   :  { %1017 = vmatpush3.bf16.msra.mxu1 %v1112_v35  ;;  %1032 = vmatprep.mubr.msk.bf16.mxu1 %vm1273_vm0, %v1272_v0 }
  0xd3   :  { %1018 = vmatprep.subr.bf16.mxu1 %v1272_v0 }
  0xd6   :  { %1019 = vmatpush3.bf16.msra.mxu1 %v1113_v37 }
  0xd7   :  { %1020 = vmatprep.subr.bf16.mxu1 %v1272_v0 }
  0xda   :  { %1021 = vmatpush3.bf16.msra.mxu1 %v1114_v38 }
  0xdb   :  { %1022 = vmatprep.subr.bf16.mxu1 %v1272_v0 }
  0xde   :  { %1023 = vmatpush3.bf16.msra.mxu1 %v1115_v39 }
  0xdf   :  { %1024 = vmatprep.subr.bf16.mxu1 %v1272_v0 }
  0xe2   :  { %1025 = vmatpush3.bf16.msra.mxu1 %v1116_v40 }
  0xe3   :  { %1026 = vmatprep.subr.bf16.mxu1 %v1272_v0 }
  0xe6   :  { %1027 = vmatpush3.bf16.msra.mxu1 %v1117_v41 }
  0xe7   :  { %1028 = vmatprep.subr.bf16.mxu1 %v1272_v0 }
  0xea   :  { %1029 = vmatpush3.bf16.msra.mxu1 %v1118_v50 }
  0xeb   :  { %1030 = vmatprep.subr.bf16.mxu1 %v1272_v0 }
  0xee   :  { %1031 = vmatpush3.bf16.msra.mxu1 %v1119_v51 }
  0xef   :  { %1056 = vmatprep.subr.bf16.mxu1 %v1272_v0 }
 0x12b   :  { %v243_v43 = vpop.f32.mrf.mxu0 }
 0x12c   :  { %v244_v44 = vadd.f32 %v846_v42, %v243_v43 }
 0x12d   :  { %v974_v45 = vpop.f32.mrf.mxu0 }
 0x12e   :  { %v249_v46 = vmax.f32 %v244_v44, 0.0 }
 0x12f   :  { %v246_v47 = vpop.f32.mrf.mxu0 }
 0x130   :  { %v250_v48 = vpack.c.bf16 %v249_v46, %v249_v46 }
 0x131   :  { %v975_v49 = vpop.f32.mrf.mxu0 }
 0x132   :  { %1013 = vmatmul.mubr.bf16.vlgmr.msra.gmra.mxu0 %v250_v48 }
 0x133   :  { %1052 = vmatprep.mubr.msk.bf16.mxu0 %vm1273_vm0, %v1272_v0  ;;  %1037 = vmatpush3.bf16.msra.mxu0 %v1120_v52 }
 0x134   :  { %1038 = vmatprep.subr.bf16.mxu0 %v1272_v0 }
 0x137   :  { %1039 = vmatpush3.bf16.msra.mxu0 %v1121_v53 }
 0x138   :  { %1040 = vmatprep.subr.bf16.mxu0 %v1272_v0 }
 0x13b   :  { %1041 = vmatpush3.bf16.msra.mxu0 %v1122_v54 }
 0x13c   :  { %1042 = vmatprep.subr.bf16.mxu0 %v1272_v0 }
 0x13f   :  { %1043 = vmatpush3.bf16.msra.mxu0 %v1123_v55 }
 0x140   :  { %1044 = vmatprep.subr.bf16.mxu0 %v1272_v0 }
 0x143   :  { %1045 = vmatpush3.bf16.msra.mxu0 %v1124_v56 }
 0x144   :  { %1046 = vmatprep.subr.bf16.mxu0 %v1272_v0 }
 0x147   :  { %1047 = vmatpush3.bf16.msra.mxu0 %v1125_v57 }
 0x148   :  { %1048 = vmatprep.subr.bf16.mxu0 %v1272_v0 }
 0x14b   :  { %1049 = vmatpush3.bf16.msra.mxu0 %v1126_v10 }
 0x14c   :  { %1050 = vmatprep.subr.bf16.mxu0 %v1272_v0 }
 0x14f   :  { %1051 = vmatpush3.bf16.msra.mxu0 %v1127_v11 }
 0x191   :  { %v380_v58 = vpop.f32.mrf.mxu1 }
 0x192   :  { %v381_v63 = vadd.f32 %v857_v62, %v380_v58 }
 0x193   :  { %v994_v59 = vpop.f32.mrf.mxu1 }
 0x194   :  { %v386_v3 = vpack.c.bf16 %v381_v63, %v381_v63 }
 0x195   :  { %v383_v60 = vpop.f32.mrf.mxu1 }
 0x197   :  { %v995_v61 = vpop.f32.mrf.mxu1 }
 0x1f2   :  { %v492_v2 = vpop.f32.mrf.mxu0 }
 0x1f3   :  { %v493_v4 = vadd.f32 %v866_v1, %v492_v2 }
 0x1f4   :  { %v1014_v5 = vpop.f32.mrf.mxu0 }
 0x1f5   :  { %v498_v6 = vpack.c.bf16 %v493_v4, %v493_v4 }
 0x1f6   :  { %v495_v7 = vpop.f32.mrf.mxu0 }
 0x1f7   :  { %v499_v8 = vadd.bf16 %v498_v6, %v386_v3 }
 0x1f8   :  { %v1015_v9 = vpop.f32.mrf.mxu0 }
 0x1f9   :  { %1033 = vmatmul.mubr.bf16.vlgmr.msra.gmra.mxu1 %v499_v8 }
 0x1fa   :  { %1072 = vmatprep.mubr.msk.bf16.mxu1 %vm1273_vm0, %v1272_v0  ;;  %1057 = vmatpush3.bf16.msra.mxu1 %v1128_v12 }
 0x1fb   :  { %1058 = vmatprep.subr.bf16.mxu1 %v1272_v0 }
 0x1fe   :  { %1059 = vmatpush3.bf16.msra.mxu1 %v1129_v13 }
 0x1ff   :  { %1060 = vmatprep.subr.bf16.mxu1 %v1272_v0 }
 0x202   :  { %1061 = vmatpush3.bf16.msra.mxu1 %v1130_v14 }
 0x203   :  { %1062 = vmatprep.subr.bf16.mxu1 %v1272_v0 }
 0x206   :  { %1063 = vmatpush3.bf16.msra.mxu1 %v1131_v15 }
 0x207   :  { %1064 = vmatprep.subr.bf16.mxu1 %v1272_v0 }
 0x20a   :  { %1065 = vmatpush3.bf16.msra.mxu1 %v1132_v16 }
 0x20b   :  { %1066 = vmatprep.subr.bf16.mxu1 %v1272_v0 }
 0x20e   :  { %1067 = vmatpush3.bf16.msra.mxu1 %v1133_v17 }
 0x20f   :  { %1068 = vmatprep.subr.bf16.mxu1 %v1272_v0 }
 0x212   :  { %1069 = vmatpush3.bf16.msra.mxu1 %v1134_v26 }
 0x213   :  { %1070 = vmatprep.subr.bf16.mxu1 %v1272_v0 }
 0x216   :  { %1071 = vmatpush3.bf16.msra.mxu1 %v1135_v27 }
 0x2b9   :  { %v605_v19 = vpop.f32.mrf.mxu1 }
 0x2ba   :  { %v606_v20 = vadd.f32 %v875_v18, %v605_v19 }
 0x2bb   :  { %v1034_v21 = vpop.f32.mrf.mxu1 }
 0x2bc   :  { %v611_v22 = vmax.f32 %v606_v20, 0.0 }
 0x2bd   :  { %v608_v23 = vpop.f32.mrf.mxu1 }
 0x2be   :  { %v612_v24 = vpack.c.bf16 %v611_v22, %v611_v22 }
 0x2bf   :  { %v1035_v25 = vpop.f32.mrf.mxu1 }
 0x2c0   :  { %1053 = vmatmul.mubr.bf16.vlgmr.msra.gmra.mxu0 %v612_v24 }
 0x380   :  { %v718_v29 = vpop.f32.mrf.mxu0 }
 0x381   :  { %v719_v30 = vadd.f32 %v884_v28, %v718_v29 }
 0x382   :  { %v1054_v31 = vpop.f32.mrf.mxu0 }
 0x383   :  { %v724_v32 = vmax.f32 %v719_v30, 0.0 }
 0x384   :  { %v721_v33 = vpop.f32.mrf.mxu0 }
 0x385   :  { %v725_v34 = vpack.c.bf16 %v724_v32, %v724_v32 }
 0x386   :  { %v1055_v35 = vpop.f32.mrf.mxu0 }
 0x387   :  { %1073 = vmatmul.mubr.bf16.vlgmr.msra.gmra.mxu1 %v725_v34 }
 0x447   :  { %v831_v37 = vpop.f32.mrf.mxu1 }
 0x448   :  { %v832_v0 = vadd.f32 %v893_v36, %v831_v37 }
 0x449   :  { %v1074_v38 = vpop.f32.mrf.mxu1 }
 0x44a   :  { %837 = vst [vmem:[%s1505_s16] sm:$0xff] %v832_v0 }
 0x44b   :  { %v834_v39 = vpop.f32.mrf.mxu1 }
 0x44d   :  { %v1075_v40 = vpop.f32.mrf.mxu1 }
 0x44e   :  { %842 = vsyncpa [#allocation3], 1 }
 0x44f   :  { %843 = vsyncpa [#allocation5], 1 }
 0x450   :  { %844 = vsyncpa [#allocation8], 1 }
 0x451   :  { %845 = vsyncpa [#allocation11], 1 }

</bundles_post_ra>
